<compile_context>
chip_gen: v6e
topology: v6e:2x2x1
jax: 0.10.0
libtpu: 0.0.40
codegen_flags: <defaults>
</compile_context>

<pallas_src>
import math

import numpy as np
import jax
import jax.numpy as jnp
from jax.experimental import pallas as pl
from jax.experimental.pallas import tpu as pltpu

R_NM = 360.0 * 60.0 / (2.0 * math.pi)   # earth radius in nautical miles / radian
LANES = 128                             # candidate problems per lane block


def _round_up(x, m):
    return (x + m - 1) // m * m


def _fix_indices(schedule, n_obs, n_mov):
    """For each observation (in log order): index of the fix it is taken from."""
    fix_idx = []
    m = 0
    for tag in schedule:
        if tag == "obs":
            fix_idx.append(m)
        else:
            m += 1
    assert len(fix_idx) == n_obs and m == n_mov
    return tuple(fix_idx)


def _make_nav_kernel(fix_idx, n_obs, n_mov, out_rows):
    npos = n_mov + 1

    def kernel(params_ref, cumdlat_ref, dlat_ref, dy_ref,
               gplat_ref, gplon_ref, cosgp_ref, zd_ref, out_ref):
        lat0 = params_ref[0:1, :]       # (1, LANES) starting latitude  [rad]
        lon0 = params_ref[1:2, :]       # (1, LANES) starting longitude [rad]
        obs_err = params_ref[2:3, :]    # (1, LANES) observation error  [deg]

        # ---- all position latitudes at once (prefix sum precomputed host-side) ----
        lat_mat = lat0 + cumdlat_ref[...]                     # (npos, LANES)
        s = jnp.sin(lat_mat)
        psi_mat = 0.5 * jnp.log((1.0 + s) / (1.0 - s))        # atanh(sin(lat)) == Mercator lat
        cos_mat = jnp.cos(lat_mat)                            # reused below (no recompute)

        # ---- vectorized per-leg Mercator math (single pass over all movements) ----
        merc = psi_mat[1:npos, :] - psi_mat[0:n_mov, :]       # (n_mov, LANES)
        # 1e-6 threshold is f32-appropriate (reference uses 1e-12 in f64); both
        # branches converge, so near-east/west legs differ only at ~1e-7 rad.
        small = jnp.abs(merc) < 1e-6
        safe_merc = jnp.where(small, 1.0, merc)               # guard the divide
        lat_ratio = jnp.where(small, cos_mat[0:n_mov, :], dlat_ref[...] / safe_merc)
        dlon = dy_ref[...] * pl.reciprocal(lat_ratio, approx=False)   # (n_mov, LANES)

        # ---- longitude: only a short chain of cheap adds remains ordered -----------
        # TODO(synk): for long routes (n_mov >> 8) switch this unrolled chain to a
        # lax.fori_loop accumulating into a VMEM scratch to bound vreg live ranges.
        lon_rows = [lon0]
        acc = lon0
        for i in range(n_mov):
            acc = acc + dlon[i:i + 1, :]
            lon_rows.append(acc)
        lon_mat = jnp.concatenate(lon_rows, axis=0)           # (npos, LANES)
        # TODO(synk): move_rhumb's "went past a pole" ValueError has no kernel
        # equivalent (cannot raise); caller must keep tracks away from the poles.

        # ---- all observations in ONE vectorized haversine pass ----------------------
        # Fix rows are picked with static (compile-time) slices, not iota/select.
        fix_lat = jnp.concatenate([lat_mat[fi:fi + 1, :] for fi in fix_idx], axis=0)
        cos_fix = jnp.concatenate([cos_mat[fi:fi + 1, :] for fi in fix_idx], axis=0)
        fix_lon = jnp.concatenate([lon_rows[fi] for fi in fix_idx], axis=0)

        dlat_o = gplat_ref[...] - fix_lat                     # (n_obs, LANES)
        dlon_o = gplon_ref[...] - fix_lon
        a = (jnp.square(jnp.sin(0.5 * dlat_o))
             + cos_fix * cosgp_ref[...] * jnp.square(jnp.sin(0.5 * dlon_o)))
        a = jnp.clip(a, 0.0, 1.0)                             # keep sqrt(1-a) NaN-free
        # arctan2 kept (vs 2*asin) for exact parity with the PyTorch module and a
        # known-good Mosaic lowering.
        dist_rad = 2.0 * jnp.arctan2(jnp.sqrt(a), jnp.sqrt(1.0 - a))
        dist_gp_nm = dist_rad * (180.0 / math.pi) * 60.0
        # (90 - (alt + obs_err))*60 == zd_nm - 60*obs_err
        derr = zd_ref[...] - 60.0 * obs_err - dist_gp_nm      # (n_obs, LANES)
        loss = jnp.sum(jnp.square(derr), axis=0, keepdims=True)   # (1, LANES)

        # ---- one full-width, sublane-aligned store of the whole output tile ---------
        pad = out_rows - (2 * npos + n_obs + 1)
        pieces = [lat_mat, lon_mat, derr, loss]
        if pad:
            pieces.append(jnp.zeros((pad, LANES), jnp.float32))
        out_ref[...] = jnp.concatenate(pieces, axis=0)

    return kernel


def navigation_forward_batched(start_lat, start_lon, observation_error,
                               schedule, obs_tbl, mov_tbl):
    """Lane-batched Pallas forward for any number of candidate (lat, lon, err) triples.

    Returns (positions (B, n_mov+1, 2), dist_errors (B, n_obs), loss (B,))."""
    start_lat = np.atleast_1d(np.asarray(start_lat, np.float64))
    start_lon = np.atleast_1d(np.asarray(start_lon, np.float64))
    observation_error = np.atleast_1d(np.asarray(observation_error, np.float64))
    B = start_lat.shape[0]
    assert start_lon.shape[0] == B and observation_error.shape[0] == B and B >= 1

    obs_tbl = np.asarray(obs_tbl, np.float64)   # (n_obs, 3) [gp_lat, gp_lon, alt_deg]
    mov_tbl = np.asarray(mov_tbl, np.float64)   # (n_mov, 2) [bearing_rad, distance_nm]
    n_obs, n_mov = obs_tbl.shape[0], mov_tbl.shape[0]
    assert n_obs >= 1 and n_mov >= 1
    npos = n_mov + 1
    fix_idx = _fix_indices(tuple(schedule), n_obs, n_mov)

    # ---- host-side precompute of all lane-invariant constants ----------------------
    bearing, dist_nm = mov_tbl[:, 0], mov_tbl[:, 1]
    dlat_leg = np.cos(bearing) * dist_nm / R_NM          # cos(-b) == cos(b)
    dy_leg = np.sin(bearing) * dist_nm / R_NM            # -sin(-b) == sin(b)
    cum_dlat = np.concatenate([[0.0], np.cumsum(dlat_leg)])

    gp_lat, gp_lon, alt_deg = obs_tbl[:, 0], obs_tbl[:, 1], obs_tbl[:, 2]
    cos_gp = np.cos(gp_lat)
    zd_nm = (90.0 - alt_deg) * 60.0

    def bcast(v):   # lane-dense (rows, LANES) f32 slab
        v = np.asarray(v, np.float64).reshape(-1, 1)
        return np.ascontiguousarray(np.broadcast_to(v, (v.shape[0], LANES)),
                                    dtype=np.float32)

    mov_cumdlat = bcast(cum_dlat)        # (npos, LANES)
    mov_dlat = bcast(dlat_leg)           # (n_mov, LANES)
    mov_dy = bcast(dy_leg)               # (n_mov, LANES)
    obs_gplat = bcast(gp_lat)            # (n_obs, LANES)
    obs_gplon = bcast(gp_lon)
    obs_cosgp = bcast(cos_gp)
    obs_zd = bcast(zd_nm)

    # ---- candidates batched along lanes, blocked over a parallel grid --------------
    B_pad = _round_up(B, LANES)
    num_blocks = B_pad // LANES
    params = np.empty((3, B_pad), np.float32)
    params[0, :B], params[0, B:] = start_lat, start_lat[-1]   # replicate last candidate
    params[1, :B], params[1, B:] = start_lon, start_lon[-1]   # so padded lanes stay
    params[2, :B], params[2, B:] = observation_error, observation_error[-1]  # finite

    out_rows = _round_up(2 * npos + n_obs + 1, 8)
    kernel = _make_nav_kernel(fix_idx, n_obs, n_mov, out_rows)

    grid_spec = pltpu.PrefetchScalarGridSpec(
        num_scalar_prefetch=0,
        grid=(num_blocks,),
        in_specs=[
            pl.BlockSpec((3, LANES), lambda i: (0, i)),          # params (per block)
            pl.BlockSpec((npos, LANES), lambda i: (0, 0)),       # cumsum(dlat)
            pl.BlockSpec((n_mov, LANES), lambda i: (0, 0)),      # dlat per leg
            pl.BlockSpec((n_mov, LANES), lambda i: (0, 0)),      # sin(b)*dist/R per leg
            pl.BlockSpec((n_obs, LANES), lambda i: (0, 0)),      # gp lat
            pl.BlockSpec((n_obs, LANES), lambda i: (0, 0)),      # gp lon
            pl.BlockSpec((n_obs, LANES), lambda i: (0, 0)),      # cos(gp lat)
            pl.BlockSpec((n_obs, LANES), lambda i: (0, 0)),      # (90-alt)*60
        ],
        out_specs=pl.BlockSpec((out_rows, LANES), lambda i: (0, i)),
    )

    out = pl.pallas_call(
        kernel,
        out_shape=jax.ShapeDtypeStruct((out_rows, B_pad), jnp.float32),
        grid_spec=grid_spec,
        compiler_params=pltpu.CompilerParams(dimension_semantics=("parallel",)),
        cost_estimate=pl.CostEstimate(
            flops=num_blocks * LANES * (20 * npos + 20 * n_mov + 30 * n_obs),
            transcendentals=num_blocks * LANES * (3 * npos + 6 * n_obs),
            bytes_accessed=4 * (3 * B_pad + (npos + 2 * n_mov + 4 * n_obs) * LANES
                                + out_rows * B_pad),
        ),
    )(jnp.asarray(params), jnp.asarray(mov_cumdlat), jnp.asarray(mov_dlat),
      jnp.asarray(mov_dy), jnp.asarray(obs_gplat), jnp.asarray(obs_gplon),
      jnp.asarray(obs_cosgp), jnp.asarray(obs_zd))

    lat_rows = out[0:npos, :B]                                   # (npos, B)
    lon_rows = out[npos:2 * npos, :B]                            # (npos, B)
    derr = out[2 * npos:2 * npos + n_obs, :B]                    # (n_obs, B)
    loss = out[2 * npos + n_obs, :B]                             # (B,)
    positions = jnp.stack([lat_rows.T, lon_rows.T], axis=-1)     # (B, npos, 2)
    return positions, derr.T, loss


def navigation_forward(starting_lat, starting_lon, observation_error,
                       schedule, obs_tbl, mov_tbl):
    """Single-problem interface matching NavigationModel.forward()."""
    positions, derrs, losses = navigation_forward_batched(
        [starting_lat], [starting_lon], [observation_error],
        schedule, obs_tbl, mov_tbl)
    return positions[0], derrs[0], losses[0]


# ---------------- pure-numpy reference (mirrors the PyTorch forward) ----------------
def reference_forward(starting_lat, starting_lon, observation_error,
                      schedule, obs_tbl, mov_tbl):
    lat, lon = float(starting_lat), float(starting_lon)
    obs_error = float(observation_error)
    positions = [(lat, lon)]
    derrs = []
    loss = 0.0
    oi = mi = 0
    for tag in schedule:
        if tag == "obs":
            gp_lat, gp_lon, alt = (float(v) for v in obs_tbl[oi])
            alt_deg = alt + obs_error
            dlat = gp_lat - lat
            dlon = gp_lon - lon
            a = (math.sin(dlat / 2.0) ** 2
                 + math.cos(lat) * math.cos(gp_lat) * math.sin(dlon / 2.0) ** 2)
            dist_rad = 2.0 * math.atan2(math.sqrt(a), math.sqrt(1.0 - a))
            dist_gp_nm = math.degrees(dist_rad) * 60.0
            dist_nm = (90.0 - alt_deg) * 60.0 - dist_gp_nm
            loss += dist_nm ** 2
            derrs.append(dist_nm)
            oi += 1
        else:
            bearing, dnm = (float(v) for v in mov_tbl[mi])
            dist_r = dnm / R_NM
            lat_new = lat + math.cos(-bearing) * dist_r
            merc = math.log(math.tan(math.pi / 4.0 + lat_new / 2.0)
                            / math.tan(math.pi / 4.0 + lat / 2.0))
            lat_ratio = math.cos(lat) if abs(merc) < 1e-12 else (lat_new - lat) / merc
            lon = lon - math.sin(-bearing) * dist_r / lat_ratio
            lat = lat_new
            positions.append((lat, lon))
            mi += 1
    return np.array(positions), np.array(derrs), loss


if __name__ == "__main__":
    key = jax.random.PRNGKey(0)
    k1, k2, k3, k4, k5 = jax.random.split(key, 5)

    # deterministic "ship's log": 4 star sights + 2 rhumb-line legs
    schedule = ("obs", "mov", "obs", "obs", "mov", "obs")
    star_names = ["Vega", "Sirius", "Canopus", "Arcturus"]
    n_obs, n_mov = 4, 2

    base_lat = 0.6      # rad (~34.4 N)
    base_lon = -2.1     # rad (~120.3 W)

    gp_lat = base_lat + jax.random.uniform(k1, (n_obs,), minval=-0.3, maxval=0.3)
    gp_lon = base_lon + jax.random.uniform(k2, (n_obs,), minval=-0.3, maxval=0.3)
    alt_deg = jax.random.uniform(k3, (n_obs,), minval=55.0, maxval=80.0)
    bearing = jax.random.uniform(k4, (n_mov,), minval=0.0, maxval=2.0 * math.pi)
    dist_nm = jnp.array([6.0 * 4.0, 5.0 * 6.0])   # speed_knots * duration_hours

    obs_tbl = np.stack([np.asarray(gp_lat, np.float32),
                        np.asarray(gp_lon, np.float32),
                        np.asarray(alt_deg, np.float32)], axis=1)
    mov_tbl = np.stack([np.asarray(bearing, np.float32),
                        np.asarray(dist_nm, np.float32)], axis=1)

    # ---- small candidate batch (1 lane block) ---------------------------------------
    B = 8
    pert = np.asarray(jax.random.uniform(k5, (B, 3), minval=-1.0, maxval=1.0),
                      dtype=np.float32)
    cand_lat = np.float64(base_lat) + 0.02 * pert[:, 0].astype(np.float64)
    cand_lon = np.float64(base_lon) + 0.02 * pert[:, 1].astype(np.float64)
    cand_err = 0.2 * pert[:, 2].astype(np.float64)
    cand_lat[0], cand_lon[0], cand_err[0] = base_lat, base_lon, 0.0

    positions_b, dist_errs_b, losses_b = navigation_forward_batched(
        cand_lat, cand_lon, cand_err, schedule, obs_tbl, mov_tbl)
    jax.block_until_ready((positions_b, dist_errs_b, losses_b))

    for b in (0, B - 1):
        ref_pos, ref_derr, ref_loss = reference_forward(
            cand_lat[b], cand_lon[b], cand_err[b], schedule, obs_tbl, mov_tbl)
        assert np.allclose(np.asarray(positions_b[b]), ref_pos, rtol=1e-3, atol=1e-3)
        assert np.allclose(np.asarray(dist_errs_b[b]), ref_derr, rtol=1e-3, atol=0.5)
        assert np.allclose(float(losses_b[b]), ref_loss, rtol=1e-2)

    # ---- larger candidate batch (>128 lanes -> multi-block parallel grid) -----------
    B2 = 200
    pert2 = np.asarray(jax.random.uniform(jax.random.PRNGKey(1), (B2, 3),
                                          minval=-1.0, maxval=1.0), dtype=np.float64)
    c2_lat = base_lat + 0.02 * pert2[:, 0]
    c2_lon = base_lon + 0.02 * pert2[:, 1]
    c2_err = 0.2 * pert2[:, 2]
    pos2, derr2, loss2 = navigation_forward_batched(
        c2_lat, c2_lon, c2_err, schedule, obs_tbl, mov_tbl)
    jax.block_until_ready((pos2, derr2, loss2))
    for b in (0, B2 - 1):
        ref_pos, ref_derr, ref_loss = reference_forward(
            c2_lat[b], c2_lon[b], c2_err[b], schedule, obs_tbl, mov_tbl)
        assert np.allclose(np.asarray(pos2[b]), ref_pos, rtol=1e-3, atol=1e-3)
        assert np.allclose(np.asarray(derr2[b]), ref_derr, rtol=1e-3, atol=0.5)
        assert np.allclose(float(loss2[b]), ref_loss, rtol=1e-2)

    # ---- single-problem interface (exact mirror of the module's forward signature) --
    pos0, derr0, loss0 = navigation_forward(
        base_lat, base_lon, 0.0, schedule, obs_tbl, mov_tbl)
    jax.block_until_ready((pos0, derr0, loss0))
    ref_pos, ref_derr, ref_loss = reference_forward(
        base_lat, base_lon, 0.0, schedule, obs_tbl, mov_tbl)
    assert np.allclose(np.asarray(pos0), ref_pos, rtol=1e-3, atol=1e-3)
    assert np.allclose(np.asarray(derr0), ref_derr, rtol=1e-3, atol=0.5)
    assert np.allclose(float(loss0), ref_loss, rtol=1e-2)

    # mirror of the PyTorch return structure (host-side glue, not compute)
    dist_error_report = list(zip(star_names, np.asarray(derr0).tolist()))
    del dist_error_report  # (star, NM) pairs, analogous to `dist_errors`

    print("KERNEL_OK")
</pallas_src>

<mosaic_0001>
module attributes {stable_mosaic.version = 11 : i64} {
  func.func @kernel(%arg0: i32, %arg1: memref<3x128xf32, #tpu.memory_space<vmem>>, %arg2: memref<3x128xf32, #tpu.memory_space<vmem>>, %arg3: memref<2x128xf32, #tpu.memory_space<vmem>>, %arg4: memref<2x128xf32, #tpu.memory_space<vmem>>, %arg5: memref<4x128xf32, #tpu.memory_space<vmem>>, %arg6: memref<4x128xf32, #tpu.memory_space<vmem>>, %arg7: memref<4x128xf32, #tpu.memory_space<vmem>>, %arg8: memref<4x128xf32, #tpu.memory_space<vmem>>, %arg9: memref<16x128xf32, #tpu.memory_space<vmem>>) attributes {dimension_semantics = [#tpu.dimension_semantics<parallel>], iteration_bounds = array<i64: 1>, scalar_prefetch = 0 : i64, scratch_operands = 0 : i64, tpu.core_type = #tpu.core_type<tc>, window_params = [{transform_indices = @transform_0, window_bounds = array<i64: 3, 128>}, {pipeline_mode = #tpu.pipeline_mode<synchronous>, transform_indices = @transform_1, window_bounds = array<i64: 3, 128>}, {pipeline_mode = #tpu.pipeline_mode<synchronous>, transform_indices = @transform_2, window_bounds = array<i64: 2, 128>}, {pipeline_mode = #tpu.pipeline_mode<synchronous>, transform_indices = @transform_3, window_bounds = array<i64: 2, 128>}, {pipeline_mode = #tpu.pipeline_mode<synchronous>, transform_indices = @transform_4, window_bounds = array<i64: 4, 128>}, {pipeline_mode = #tpu.pipeline_mode<synchronous>, transform_indices = @transform_5, window_bounds = array<i64: 4, 128>}, {pipeline_mode = #tpu.pipeline_mode<synchronous>, transform_indices = @transform_6, window_bounds = array<i64: 4, 128>}, {pipeline_mode = #tpu.pipeline_mode<synchronous>, transform_indices = @transform_7, window_bounds = array<i64: 4, 128>}, {transform_indices = @transform_8, window_bounds = array<i64: 16, 128>}]} {
    %c0 = arith.constant 0 : index
    %c0_0 = arith.constant 0 : index
    %0 = vector.load %arg1[%c0, %c0_0] : memref<3x128xf32, #tpu.memory_space<vmem>>, vector<1x128xf32>
    %c1 = arith.constant 1 : index
    %c0_1 = arith.constant 0 : index
    %1 = vector.load %arg1[%c1, %c0_1] : memref<3x128xf32, #tpu.memory_space<vmem>>, vector<1x128xf32>
    %c2 = arith.constant 2 : index
    %c0_2 = arith.constant 0 : index
    %2 = vector.load %arg1[%c2, %c0_2] : memref<3x128xf32, #tpu.memory_space<vmem>>, vector<1x128xf32>
    %c0_3 = arith.constant 0 : index
    %c0_4 = arith.constant 0 : index
    %3 = vector.load %arg2[%c0_3, %c0_4] : memref<3x128xf32, #tpu.memory_space<vmem>>, vector<3x128xf32>
    %4 = vector.broadcast %0 : vector<1x128xf32> to vector<3x128xf32>
    %5 = arith.addf %4, %3 : vector<3x128xf32>
    %6 = math.sin %5 : vector<3x128xf32>
    %cst = arith.constant 1.000000e+00 : f32
    %7 = vector.broadcast %cst : f32 to vector<3x128xf32>
    %8 = arith.addf %7, %6 : vector<3x128xf32>
    %cst_5 = arith.constant 1.000000e+00 : f32
    %9 = vector.broadcast %cst_5 : f32 to vector<3x128xf32>
    %10 = arith.subf %9, %6 : vector<3x128xf32>
    %11 = arith.divf %8, %10 : vector<3x128xf32>
    %12 = math.log %11 : vector<3x128xf32>
    %cst_6 = arith.constant 5.000000e-01 : f32
    %13 = vector.broadcast %cst_6 : f32 to vector<3x128xf32>
    %14 = arith.mulf %13, %12 : vector<3x128xf32>
    %15 = math.cos %5 : vector<3x128xf32>
    %16 = vector.extract_strided_slice %14 {offsets = [1, 0], sizes = [2, 128], strides = [1, 1]} : vector<3x128xf32> to vector<2x128xf32>
    %17 = vector.extract_strided_slice %14 {offsets = [0, 0], sizes = [2, 128], strides = [1, 1]} : vector<3x128xf32> to vector<2x128xf32>
    %18 = arith.subf %16, %17 : vector<2x128xf32>
    %19 = math.absf %18 : vector<2x128xf32>
    %cst_7 = arith.constant 9.99999997E-7 : f32
    %20 = vector.broadcast %cst_7 : f32 to vector<2x128xf32>
    %21 = arith.cmpf olt, %19, %20 : vector<2x128xf32>
    %cst_8 = arith.constant 1.000000e+00 : f32
    %22 = vector.broadcast %cst_8 : f32 to vector<2x128xf32>
    %23 = arith.select %21, %22, %18 : vector<2x128xi1>, vector<2x128xf32>
    %24 = vector.extract_strided_slice %15 {offsets = [0, 0], sizes = [2, 128], strides = [1, 1]} : vector<3x128xf32> to vector<2x128xf32>
    %c0_9 = arith.constant 0 : index
    %c0_10 = arith.constant 0 : index
    %25 = vector.load %arg3[%c0_9, %c0_10] : memref<2x128xf32, #tpu.memory_space<vmem>>, vector<2x128xf32>
    %26 = arith.divf %25, %23 : vector<2x128xf32>
    %27 = arith.select %21, %24, %26 : vector<2x128xi1>, vector<2x128xf32>
    %c0_11 = arith.constant 0 : index
    %c0_12 = arith.constant 0 : index
    %28 = vector.load %arg4[%c0_11, %c0_12] : memref<2x128xf32, #tpu.memory_space<vmem>>, vector<2x128xf32>
    %29 = tpu.reciprocal %27 : vector<2x128xf32> -> vector<2x128xf32>
    %30 = arith.mulf %28, %29 : vector<2x128xf32>
    %31 = vector.extract_strided_slice %30 {offsets = [0, 0], sizes = [1, 128], strides = [1, 1]} : vector<2x128xf32> to vector<1x128xf32>
    %32 = arith.addf %1, %31 : vector<1x128xf32>
    %33 = vector.extract_strided_slice %30 {offsets = [1, 0], sizes = [1, 128], strides = [1, 1]} : vector<2x128xf32> to vector<1x128xf32>
    %34 = arith.addf %32, %33 : vector<1x128xf32>
    %35 = tpu.concatenate %1, %32, %34 in 0 : vector<1x128xf32>, vector<1x128xf32>, vector<1x128xf32> -> vector<3x128xf32>
    %36 = vector.extract_strided_slice %5 {offsets = [0, 0], sizes = [1, 128], strides = [1, 1]} : vector<3x128xf32> to vector<1x128xf32>
    %37 = vector.extract_strided_slice %5 {offsets = [1, 0], sizes = [1, 128], strides = [1, 1]} : vector<3x128xf32> to vector<1x128xf32>
    %38 = vector.extract_strided_slice %5 {offsets = [1, 0], sizes = [1, 128], strides = [1, 1]} : vector<3x128xf32> to vector<1x128xf32>
    %39 = vector.extract_strided_slice %5 {offsets = [2, 0], sizes = [1, 128], strides = [1, 1]} : vector<3x128xf32> to vector<1x128xf32>
    %40 = tpu.concatenate %36, %37, %38, %39 in 0 : vector<1x128xf32>, vector<1x128xf32>, vector<1x128xf32>, vector<1x128xf32> -> vector<4x128xf32>
    %41 = vector.extract_strided_slice %15 {offsets = [0, 0], sizes = [1, 128], strides = [1, 1]} : vector<3x128xf32> to vector<1x128xf32>
    %42 = vector.extract_strided_slice %15 {offsets = [1, 0], sizes = [1, 128], strides = [1, 1]} : vector<3x128xf32> to vector<1x128xf32>
    %43 = vector.extract_strided_slice %15 {offsets = [1, 0], sizes = [1, 128], strides = [1, 1]} : vector<3x128xf32> to vector<1x128xf32>
    %44 = vector.extract_strided_slice %15 {offsets = [2, 0], sizes = [1, 128], strides = [1, 1]} : vector<3x128xf32> to vector<1x128xf32>
    %45 = tpu.concatenate %41, %42, %43, %44 in 0 : vector<1x128xf32>, vector<1x128xf32>, vector<1x128xf32>, vector<1x128xf32> -> vector<4x128xf32>
    %46 = tpu.concatenate %1, %32, %32, %34 in 0 : vector<1x128xf32>, vector<1x128xf32>, vector<1x128xf32>, vector<1x128xf32> -> vector<4x128xf32>
    %c0_13 = arith.constant 0 : index
    %c0_14 = arith.constant 0 : index
    %47 = vector.load %arg5[%c0_13, %c0_14] : memref<4x128xf32, #tpu.memory_space<vmem>>, vector<4x128xf32>
    %48 = arith.subf %47, %40 : vector<4x128xf32>
    %c0_15 = arith.constant 0 : index
    %c0_16 = arith.constant 0 : index
    %49 = vector.load %arg6[%c0_15, %c0_16] : memref<4x128xf32, #tpu.memory_space<vmem>>, vector<4x128xf32>
    %50 = arith.subf %49, %46 : vector<4x128xf32>
    %cst_17 = arith.constant 5.000000e-01 : f32
    %51 = vector.broadcast %cst_17 : f32 to vector<4x128xf32>
    %52 = arith.mulf %51, %48 : vector<4x128xf32>
    %53 = math.sin %52 : vector<4x128xf32>
    %54 = arith.mulf %53, %53 : vector<4x128xf32>
    %c0_18 = arith.constant 0 : index
    %c0_19 = arith.constant 0 : index
    %55 = vector.load %arg7[%c0_18, %c0_19] : memref<4x128xf32, #tpu.memory_space<vmem>>, vector<4x128xf32>
    %56 = arith.mulf %45, %55 : vector<4x128xf32>
    %cst_20 = arith.constant 5.000000e-01 : f32
    %57 = vector.broadcast %cst_20 : f32 to vector<4x128xf32>
    %58 = arith.mulf %57, %50 : vector<4x128xf32>
    %59 = math.sin %58 : vector<4x128xf32>
    %60 = arith.mulf %59, %59 : vector<4x128xf32>
    %61 = arith.mulf %56, %60 : vector<4x128xf32>
    %62 = arith.addf %54, %61 : vector<4x128xf32>
    %cst_21 = arith.constant 0.000000e+00 : f32
    %cst_22 = arith.constant 1.000000e+00 : f32
    %63 = vector.broadcast %cst_21 : f32 to vector<4x128xf32>
    %64 = arith.maximumf %63, %62 : vector<4x128xf32>
    %65 = vector.broadcast %cst_22 : f32 to vector<4x128xf32>
    %66 = arith.minimumf %65, %64 : vector<4x128xf32>
    %67 = math.sqrt %66 : vector<4x128xf32>
    %cst_23 = arith.constant 1.000000e+00 : f32
    %68 = vector.broadcast %cst_23 : f32 to vector<4x128xf32>
    %69 = arith.subf %68, %66 : vector<4x128xf32>
    %70 = math.sqrt %69 : vector<4x128xf32>
    %71 = math.atan2 %67, %70 : vector<4x128xf32>
    %cst_24 = arith.constant 2.000000e+00 : f32
    %72 = vector.broadcast %cst_24 : f32 to vector<4x128xf32>
    %73 = arith.mulf %72, %71 : vector<4x128xf32>
    %cst_25 = arith.constant 57.2957802 : f32
    %74 = vector.broadcast %cst_25 : f32 to vector<4x128xf32>
    %75 = arith.mulf %73, %74 : vector<4x128xf32>
    %cst_26 = arith.constant 6.000000e+01 : f32
    %76 = vector.broadcast %cst_26 : f32 to vector<4x128xf32>
    %77 = arith.mulf %75, %76 : vector<4x128xf32>
    %c0_27 = arith.constant 0 : index
    %c0_28 = arith.constant 0 : index
    %78 = vector.load %arg8[%c0_27, %c0_28] : memref<4x128xf32, #tpu.memory_space<vmem>>, vector<4x128xf32>
    %cst_29 = arith.constant 6.000000e+01 : f32
    %79 = vector.broadcast %cst_29 : f32 to vector<1x128xf32>
    %80 = arith.mulf %79, %2 : vector<1x128xf32>
    %81 = vector.broadcast %80 : vector<1x128xf32> to vector<4x128xf32>
    %82 = arith.subf %78, %81 : vector<4x128xf32>
    %83 = arith.subf %82, %77 : vector<4x128xf32>
    %84 = arith.mulf %83, %83 : vector<4x128xf32>
    %cst_30 = arith.constant dense<0.000000e+00> : vector<128xf32>
    %85 = vector.multi_reduction <add>, %84, %cst_30 [0] : vector<4x128xf32> to vector<128xf32>
    %86 = vector.shape_cast %85 : vector<128xf32> to vector<1x128xf32>
    %cst_31 = arith.constant 0.000000e+00 : f32
    %87 = vector.broadcast %cst_31 : f32 to vector<5x128xf32>
    %88 = tpu.concatenate %5, %35, %83, %86, %87 in 0 : vector<3x128xf32>, vector<3x128xf32>, vector<4x128xf32>, vector<1x128xf32>, vector<5x128xf32> -> vector<16x128xf32>
    %c0_32 = arith.constant 0 : index
    %c0_33 = arith.constant 0 : index
    %89 = vector.load %arg9[%c0_32, %c0_33] : memref<16x128xf32, #tpu.memory_space<vmem>>, vector<16x128xf32>
    tpu.vector_store %arg9[%c0_32, %c0_33], %88 {strides = array<i32>} : memref<16x128xf32, #tpu.memory_space<vmem>>, vector<16x128xf32>,
    return
  }
  func.func @transform_0(%arg0: i32) -> (i32, i32) {
    %c0_i32 = arith.constant 0 : i32
    %c0_i32_0 = arith.constant 0 : i32
    return %c0_i32, %arg0 : i32, i32
  }
  func.func @transform_1(%arg0: i32) -> (i32, i32) {
    %c0_i32 = arith.constant 0 : i32
    %c0_i32_0 = arith.constant 0 : i32
    %c0_i32_1 = arith.constant 0 : i32
    return %c0_i32, %c0_i32_0 : i32, i32
  }
  func.func @transform_2(%arg0: i32) -> (i32, i32) {
    %c0_i32 = arith.constant 0 : i32
    %c0_i32_0 = arith.constant 0 : i32
    %c0_i32_1 = arith.constant 0 : i32
    return %c0_i32, %c0_i32_0 : i32, i32
  }
  func.func @transform_3(%arg0: i32) -> (i32, i32) {
    %c0_i32 = arith.constant 0 : i32
    %c0_i32_0 = arith.constant 0 : i32
    %c0_i32_1 = arith.constant 0 : i32
    return %c0_i32, %c0_i32_0 : i32, i32
  }
  func.func @transform_4(%arg0: i32) -> (i32, i32) {
    %c0_i32 = arith.constant 0 : i32
    %c0_i32_0 = arith.constant 0 : i32
    %c0_i32_1 = arith.constant 0 : i32
    return %c0_i32, %c0_i32_0 : i32, i32
  }
  func.func @transform_5(%arg0: i32) -> (i32, i32) {
    %c0_i32 = arith.constant 0 : i32
    %c0_i32_0 = arith.constant 0 : i32
    %c0_i32_1 = arith.constant 0 : i32
    return %c0_i32, %c0_i32_0 : i32, i32
  }
  func.func @transform_6(%arg0: i32) -> (i32, i32) {
    %c0_i32 = arith.constant 0 : i32
    %c0_i32_0 = arith.constant 0 : i32
    %c0_i32_1 = arith.constant 0 : i32
    return %c0_i32, %c0_i32_0 : i32, i32
  }
  func.func @transform_7(%arg0: i32) -> (i32, i32) {
    %c0_i32 = arith.constant 0 : i32
    %c0_i32_0 = arith.constant 0 : i32
    %c0_i32_1 = arith.constant 0 : i32
    return %c0_i32, %c0_i32_0 : i32, i32
  }
  func.func @transform_8(%arg0: i32) -> (i32, i32) {
    %c0_i32 = arith.constant 0 : i32
    %c0_i32_0 = arith.constant 0 : i32
    return %c0_i32, %arg0 : i32, i32
  }
}

</mosaic_0001>

<bundles_post_ra>
// kernel: tpu_custom_call.1
= control target key start
LH: loop header
LB: loop body
LE: loop exit
PB: predicated region body
PF: predicated region fallthrough
CT: control target
= control target key end

     0   :  { %13 = vsyncpa [#allocation3], 0  ;;  %s1154_s0 = inlined_call_operand.hbm [shape: f32[3,128], index: 0, kind: input, shape index: {}]   ;;  %s1155_s1 = inlined_call_operand.hbm [shape: f32[3,128], index: 1, kind: input, shape index: {}]   ;;  %s1156_s2 = inlined_call_operand.hbm [shape: f32[2,128], index: 2, kind: input, shape index: {}]   ;;  %s1157_s3 = inlined_call_operand.hbm [shape: f32[2,128], index: 3, kind: input, shape index: {}]   ;;  %s1158_s4 = inlined_call_operand.vmem [shape: f32[4,128], index: 4, kind: input, shape index: {}]   ;;  %s1159_s5 = inlined_call_operand.vmem [shape: f32[4,128], index: 5, kind: input, shape index: {}]   ;;  %s1160_s6 = inlined_call_operand.hbm [shape: f32[4,128], index: 6, kind: input, shape index: {}]   ;;  %s1161_s7 = inlined_call_operand.vmem [shape: f32[4,128], index: 7, kind: input, shape index: {}]   ;;  %s1162_s8 = inlined_call_operand.hbm [shape: f32[16,128], index: 8, kind: output, shape index: {}]  }
   0x1   :  { %14 = vsyncpa [#allocation6], 0 }
   0x2   :  { %15 = vsyncpa [#allocation9], 0 }
   0x3   :  { %16 = vsyncpa [#allocation4], 0  ;;  %s901_s27 = smov [#allocation5]   ;;  %s902_s29 = smov [#allocation8]  }
   0x4   :  { %s33_s28 = sshll.u32 %s901_s27, 4  ;;  %s53_s30 = sshll.u32 %s902_s29, 4  ;;  %s34_s28 = int_to_ptr.vmem [resolvable:$true] %s33_s28  ;;  %s54_s30 = int_to_ptr.vmem [resolvable:$true] %s53_s30 }
   0x5   :  { %s781_s9 = scalar_lea.vmem %s34_s28, 64  ;;  %p786_p1 = scmp.lt.s32.totalorder %s34_s28, %s34_s28 }
   0x6   :  { %p782_p0 = scmp.ne.s32.totalorder %s34_s28, %s781_s9  ;;  %p787_p2 = scmp.lt.s32.totalorder %s781_s9, %s781_s9 }
   0x8   :  { %p788_p3 = por %p787_p2, %p786_p1 }
   0xa   :  { %p789_p4 = pnand %p788_p3, %p782_p0 }
   0xc   :  { %792 = shalt.err (!%p789_p4)
}
   0xd   :  { %36 = dma.hbm_to_vmem [thread:$0]  %s1155_s1, 64, %s34_s28, [#allocation6]  }
   0xe   :  { %s801_s12 = scalar_lea.vmem %s54_s30, 32  ;;  %p806_p6 = scmp.lt.s32.totalorder %s54_s30, %s54_s30 }
   0xf   :  { %p802_p5 = scmp.ne.s32.totalorder %s54_s30, %s801_s12  ;;  %p807_p7 = scmp.lt.s32.totalorder %s801_s12, %s801_s12 }
  0x11   :  { %p808_p8 = por %p807_p7, %p806_p6 }
  0x13   :  { %p809_p9 = pnand %p808_p8, %p802_p5 }
  0x15   :  { %812 = shalt.err (!%p809_p9)
}
  0x16   :  { %56 = dma.hbm_to_vmem [thread:$0]  %s1157_s3, 32, %s54_s30, [#allocation9]  }
  0x17   :  { %s903_s15 = smov [#allocation2]   ;;  %s904_s17 = smov [#allocation7]  }
  0x18   :  { %s23_s16 = sshll.u32 %s903_s15, 4  ;;  %s43_s18 = sshll.u32 %s904_s17, 4  ;;  %s24_s16 = int_to_ptr.vmem [resolvable:$true] %s23_s16  ;;  %s44_s18 = int_to_ptr.vmem [resolvable:$true] %s43_s18 }
  0x19   :  { %s821_s19 = scalar_lea.vmem %s24_s16, 64  ;;  %p826_p11 = scmp.lt.s32.totalorder %s24_s16, %s24_s16 }
  0x1a   :  { %p822_p10 = scmp.ne.s32.totalorder %s24_s16, %s821_s19  ;;  %p827_p12 = scmp.lt.s32.totalorder %s821_s19, %s821_s19 }
  0x1c   :  { %p828_p13 = por %p827_p12, %p826_p11 }
  0x1e   :  { %p829_p0 = pnand %p828_p13, %p822_p10 }
  0x20   :  { %832 = shalt.err (!%p829_p0)
}
  0x21   :  { %26 = dma.hbm_to_vmem [thread:$0]  %s1154_s0, 64, %s24_s16, [#allocation3]  }
  0x22   :  { %s841_s21 = scalar_lea.vmem %s44_s18, 32  ;;  %p846_p2 = scmp.lt.s32.totalorder %s44_s18, %s44_s18 }
  0x23   :  { %p842_p1 = scmp.ne.s32.totalorder %s44_s18, %s841_s21  ;;  %p847_p3 = scmp.lt.s32.totalorder %s841_s21, %s841_s21 }
  0x25   :  { %p848_p4 = por %p847_p3, %p846_p2 }
  0x27   :  { %p849_p5 = pnand %p848_p4, %p842_p1 }
  0x29   :  { %852 = shalt.err (!%p849_p5)
}
  0x2a   :  { %46 = dma.hbm_to_vmem [thread:$0]  %s1156_s2, 32, %s44_s18, [#allocation6]  }
  0x2b   :  { %s905_s23 = smov [#allocation10]  }
  0x2c   :  { %s67_s24 = sshll.u32 %s905_s23, 4  ;;  %s68_s24 = int_to_ptr.vmem [resolvable:$true] %s67_s24 }
  0x2d   :  { %s861_s25 = scalar_lea.vmem %s68_s24, 64  ;;  %p866_p7 = scmp.lt.s32.totalorder %s68_s24, %s68_s24 }
  0x2e   :  { %p862_p6 = scmp.ne.s32.totalorder %s68_s24, %s861_s25  ;;  %p867_p8 = scmp.lt.s32.totalorder %s861_s25, %s861_s25 }
  0x30   :  { %p868_p9 = por %p867_p8, %p866_p7 }
  0x32   :  { %p869_p10 = pnand %p868_p9, %p862_p6 }
  0x34   :  { %872 = shalt.err (!%p869_p10)
}
  0x35   :  { %70 = dma.hbm_to_vmem [thread:$0]  %s1160_s6, 64, %s68_s24, [#allocation9]  }
  0x36   :  { %893 = dma.done.wait [#allocation3], 64  }
  0x37   :  { %894 = vsyncadd [#allocation3], 4294967232 }
  0x38   :  { %895 = dma.done.wait [#allocation6], 96  }
  0x39   :  { %896 = vsyncadd [#allocation6], 4294967200 }
  0x3a   :  { %897 = dma.done.wait [#allocation9], 96  }
  0x3b   :  { %898 = vsyncadd [#allocation9], 4294967200  ;;  %v702_v0 = vld [vmem:[#allocation2] ss:$0 sm:$0xff]  ;;  %v91_v1 = vld [vmem:[#allocation5] sm:$0x7] }
  0x3c   :  { %v977_v2 = vadd.f32 %v702_v0, %v91_v1  ;;  %v906_v14 = vmov 683565275   ;;  %v907_v16 = vmov 2475754826   ;;  %v908_v18 = vmov 2131351028  }
  0x3d   :  { %v909_v20 = vmov 2102212464   ;;  %v910_v22 = vmov 920167782   ;;  %v911_v29 = vmov 1326507024  }
  0x3e   :  { %v100_v3 = vand.u32 2139095040, %v977_v2  ;;  %v97_v5 = vand.u32 2147483647, %v977_v2  ;;  %vm99_vm7 = vcmp.lt.s32.totalorder %v977_v2, 0  ;;  %vm350_vm9 = vcmask 1041408  }
  0x3f   :  { %vm356_vm14 = vcmask 1042432  }
  0x40   :  { %v101_v4 = vshrl.u32 %v100_v3, 23  ;;  %v104_v8 = vand.u32 8388607, %v97_v5  ;;  %vm98_vm8 = vcmp.le.f32.partialorder %v97_v5, 0.7853982 }
  0x42   :  { %v703_v6 = vadd.s32 4294967169, %v101_v4  ;;  %v105_v11 = vor.u32 8388608, %v104_v8 }
  0x44   :  { %v107_v7 = vadd.s32 1, %v703_v6  ;;  %v145_v31 = vshll.u32 %v105_v11, 8 }
  0x46   :  { %vm108_vm0 = vcmp.gt.s32.totalorder %v107_v7, 0 }
  0x47   :  { %v109_v9 = vsel %vm108_vm0, %v107_v7, 0 }
  0x48   :  { %v111_v10 = vand.u32 31, %v109_v9  ;;  %v110_v12 = vshrl.u32 %v109_v9, 5 }
  0x4a   :  { %v112_v13 = vsub.s32 32, %v111_v10  ;;  %v114_v15 = vshll.u32 %v906_v14, %v111_v10  ;;  %v117_v17 = vshll.u32 %v907_v16, %v111_v10  ;;  %v120_v19 = vshll.u32 %v908_v18, %v111_v10 }
  0x4b   :  { %v123_v21 = vshll.u32 %v909_v20, %v111_v10  ;;  %v126_v23 = vshll.u32 %v910_v22, %v111_v10  ;;  %vm129_vm1 = vcmp.lt.s32.totalorder %v110_v12, 1  ;;  %vm132_vm2 = vcmp.lt.s32.totalorder %v110_v12, 4 }
  0x4c   :  { %v113_v24 = vshrl.u32 %v906_v14, %v112_v13  ;;  %v115_v25 = vshrl.u32 %v907_v16, %v112_v13  ;;  %v118_v26 = vshrl.u32 %v908_v18, %v112_v13  ;;  %v121_v27 = vshrl.u32 %v909_v20, %v112_v13 }
  0x4d   :  { %v124_v28 = vshrl.u32 %v910_v22, %v112_v13  ;;  %v127_v30 = vshrl.u32 %v911_v29, %v112_v13  ;;  %vm130_vm3 = vcmp.lt.s32.totalorder %v110_v12, 2  ;;  %vm131_vm4 = vcmp.lt.s32.totalorder %v110_v12, 3 }
  0x4e   :  { %v116_v32 = vor.u32 %v115_v25, %v114_v15  ;;  %v119_v33 = vor.u32 %v118_v26, %v117_v17  ;;  %v122_v34 = vor.u32 %v121_v27, %v120_v19 }
  0x4f   :  { %v125_v35 = vor.u32 %v124_v28, %v123_v21  ;;  %v128_v36 = vor.u32 %v127_v30, %v126_v23  ;;  %v353_v28 = vrot.slane %v977_v2, 7 }
  0x50   :  { %v133_v37 = vsel %vm129_vm1, %v113_v24, %v116_v32  ;;  %v134_v38 = vsel %vm132_vm2, %v122_v34, 2102212464  ;;  %v137_v39 = vsel %vm129_vm1, %v116_v32, %v119_v33  ;;  %v141_v40 = vsel %vm129_vm1, %v119_v33, %v122_v34 }
  0x51   :  { %v135_v41 = vsel %vm131_vm4, %v119_v33, %v134_v38  ;;  %v138_v42 = vsel %vm132_vm2, %v125_v35, 920167782  ;;  %v142_v43 = vsel %vm132_vm2, %v128_v36, 1326507024  ;;  %v355_v32 = vsel %vm350_vm9, %v977_v2, %v353_v28 }
  0x52   :  { %v139_v44 = vsel %vm131_vm4, %v122_v34, %v138_v42  ;;  %v143_v45 = vsel %vm131_vm4, %v125_v35, %v142_v43  ;;  %v136_v46 = vsel %vm130_vm3, %v133_v37, %v135_v41  ;;  %v357_v36 = vsel %vm356_vm14, %v355_v32, %v353_v28  ;;  %v366_v37 = vld [vmem:[%s1158_s4] sm:$0xf] }
  0x53   :  { %v140_v47 = vsel %vm130_vm3, %v137_v39, %v139_v44  ;;  %v144_v48 = vsel %vm130_vm3, %v141_v40, %v143_v45  ;;  %v152_v53 = vmul.u32 %v145_v31, %v136_v46  ;;  %vm189_vm1 = vweird.f32 %v977_v2 }
  0x54   :  { %v994_v49 = vmul.u32.u64.low %v145_v31, %v144_v48  ;;  %v995_v50 = vmul.u32.u64.high %v145_v31, %v144_v48, %v994_v49  ;;  %v997_v51 = vmul.u32.u64.low %v145_v31, %v140_v47  ;;  %v998_v52 = vmul.u32.u64.high %v145_v31, %v140_v47, %v997_v51 }
  0x55   :  { %v367_v44 = vsub.f32 %v366_v37, %v357_v36 }
  0x56   :  { %vm154_vm5 = vc.u32 %v995_v50, %v997_v51  ;;  %v155_v54 = vadd.s32 1, %v998_v52  ;;  %v153_v1 = vadd.s32 %v997_v51, %v995_v50 }
  0x57   :  { %v1020_v50 = vmul.f32 0.5, %v367_v44 }
  0x58   :  { %v156_v55 = vsel %vm154_vm5, %v155_v54, %v998_v52 }
  0x59   :  { %v157_v56 = vadd.s32 %v156_v55, %v152_v53  ;;  %v374_v52 = vand.u32 2139095040, %v1020_v50 }
  0x5b   :  { %v158_v57 = vadd.s32 536870912, %v157_v56  ;;  %v375_v53 = vshrl.u32 %v374_v52, 23 }
  0x5d   :  { %v159_v58 = vshrl.u32 %v158_v57, 30  ;;  %v711_v55 = vadd.s32 4294967169, %v375_v53 }
  0x5f   :  { %v160_v59 = vshll.u32 %v159_v58, 30  ;;  %v183_v19 = vsub.s32 4, %v159_v58 }
  0x61   :  { %v161_v60 = vsub.s32 %v157_v56, %v160_v59  ;;  %v184_v24 = vsel %vm99_vm7, %v183_v19, %v159_v58  ;;  %v381_v58 = vadd.s32 1, %v711_v55 }
  0x62   :  { %v186_v26 = vsel %vm98_vm8, 0, %v184_v24 }
  0x63   :  { %v163_v61 = vsub.s32 0, %v161_v60  ;;  %v190_v27 = vadd.s32 3, %v186_v26  ;;  %v301_v31 = vand.u32 3, %v186_v26  ;;  %vm382_vm2 = vcmp.gt.s32.totalorder %v381_v58, 0 }
  0x64   :  { %v383_v59 = vsel %vm382_vm2, %v381_v58, 0 }
  0x65   :  { %v704_v62 = vmin.u32 %v163_v61, %v161_v60  ;;  %v191_v30 = vand.u32 3, %v190_v27  ;;  %vm306_vm11 = vcmp.eq.s32.totalorder %v301_v31, 2  ;;  %vm303_vm13 = vcmp.eq.s32.totalorder %v301_v31, 0 }
  0x66   :  { %vm302_vm0 = vcmp.lt.s32.totalorder %v301_v31, 2 }
  0x67   :  { %v165_v63 = vclz %v704_v62  ;;  %vm196_vm10 = vcmp.eq.s32.totalorder %v191_v30, 2  ;;  %vm193_vm12 = vcmp.eq.s32.totalorder %v191_v30, 0  ;;  %vm192_vm15 = vcmp.lt.s32.totalorder %v191_v30, 2 }
  0x69   :  { %v705_v0 = vadd.s32 4294967294, %v165_v63 }
  0x6b   :  { %vm706_vm6 = vcmp.lt.s32.totalorder %v705_v0, 0 }
  0x6c   :  { %v168_v3 = vsel %vm706_vm6, 0, %v705_v0 }
  0x6d   :  { %v169_v4 = vsub.s32 32, %v168_v3  ;;  %v170_v6 = vshll.u32 %v161_v60, %v168_v3  ;;  %v173_v7 = vsub.s32 4294967266, %v168_v3  ;;  %v385_v60 = vand.u32 31, %v383_v59 }
  0x6f   :  { %v171_v8 = vshrl.u32 %v153_v1, %v169_v4  ;;  %v174_v9 = vadd.s32 127, %v173_v7  ;;  %v386_v63 = vsub.s32 32, %v385_v60  ;;  %v397_v3 = vshll.u32 %v909_v20, %v385_v60 }
  0x70   :  { %v384_v7 = vshrl.u32 %v383_v59, 5 }
  0x71   :  { %v172_v10 = vor.u32 %v171_v8, %v170_v6  ;;  %v175_v11 = vshll.u32 %v174_v9, 23  ;;  %v398_v4 = vshrl.u32 %v910_v22, %v386_v63  ;;  %v371_v6 = vand.u32 2147483647, %v1020_v50 }
  0x72   :  { %v400_v8 = vshll.u32 %v910_v22, %v385_v60  ;;  %v401_v9 = vshrl.u32 %v911_v29, %v386_v63  ;;  %v395_v19 = vshrl.u32 %v909_v20, %v386_v63  ;;  %vm406_vm3 = vcmp.lt.s32.totalorder %v384_v7, 4 }
  0x73   :  { %v176_v12 = vor.u32 4788187, %v175_v11  ;;  %v179_v13 = vcvt.s32.f32 %v172_v10  ;;  %v388_v11 = vshll.u32 %v906_v14, %v385_v60  ;;  %v378_v24 = vand.u32 8388607, %v371_v6 }
  0x74   :  { %vm403_vm5 = vcmp.lt.s32.totalorder %v384_v7, 1  ;;  %vm405_vm6 = vcmp.lt.s32.totalorder %v384_v7, 3  ;;  %v387_v44 = vshrl.u32 %v906_v14, %v386_v63 }
  0x75   :  { %v177_v15 = vand.u32 2147483647, %v176_v12  ;;  %v391_v12 = vshll.u32 %v907_v16, %v385_v60 }
  0x77   :  { %v180_v17 = vmul.f32 %v179_v13, %v177_v15  ;;  %v389_v13 = vshrl.u32 %v907_v16, %v386_v63  ;;  %v392_v15 = vshrl.u32 %v908_v18, %v386_v63 }
  0x79   :  { %v181_v21 = vxor.u32 2147483648, %v180_v17  ;;  %v390_v28 = vor.u32 %v389_v13, %v388_v11  ;;  %v393_v30 = vor.u32 %v392_v15, %v391_v12 }
  0x7b   :  { %v182_v23 = vsel %vm99_vm7, %v181_v21, %v180_v17  ;;  %v394_v17 = vshll.u32 %v908_v18, %v385_v60  ;;  %vm404_vm7 = vcmp.lt.s32.totalorder %v384_v7, 2  ;;  %v407_v52 = vsel %vm403_vm5, %v387_v44, %v390_v28  ;;  %v89_v7 = vld [vmem:[#allocation2 + $0x1] sm:$0x1] }
  0x7c   :  { %v185_v25 = vsel %vm98_vm8, %v977_v2, %v182_v23  ;;  %v399_v23 = vor.u32 %v398_v4, %v397_v3  ;;  %v331_v3 = vld [vmem:[#allocation8] sm:$0x3] }
  0x7d   :  { %747 = vcosq.f32 %v185_v25  ;;  %v396_v31 = vor.u32 %v395_v19, %v394_v17 }
  0x7e   :  { %749 = vsinq.f32 %v185_v25  ;;  %v402_v25 = vor.u32 %v401_v9, %v400_v8 }
  0x7f   :  { %v415_v37 = vsel %vm403_vm5, %v393_v30, %v396_v31 }
  0x8a   :  { %v748_v33 = vpop.eup %747 }
  0x8b   :  { %v750_v5 = vpop.eup %749  ;;  %v197_v34 = vxor.u32 2147483648, %v748_v33 }
  0x8c   :  { %v194_v35 = vxor.u32 2147483648, %v750_v5 }
  0x8d   :  { %v198_v38 = vsel %vm196_vm10, %v197_v34, %v750_v5  ;;  %v308_v39 = vsel %vm306_vm11, %v197_v34, %v750_v5  ;;  %v379_v5 = vor.u32 8388608, %v378_v24  ;;  %v416_v34 = vsel %vm406_vm3, %v402_v25, 1326507024 }
  0x8e   :  { %v195_v40 = vsel %vm193_vm12, %v748_v33, %v194_v35  ;;  %v305_v41 = vsel %vm303_vm13, %v748_v33, %v194_v35  ;;  %v412_v33 = vsel %vm406_vm3, %v399_v23, 920167782  ;;  %v411_v35 = vsel %vm403_vm5, %v390_v28, %v393_v30 }
  0x8f   :  { %v199_v42 = vsel %vm192_vm15, %v195_v40, %v198_v38  ;;  %v309_v43 = vsel %vm302_vm0, %v305_v41, %v308_v39  ;;  %v413_v36 = vsel %vm405_vm6, %v396_v31, %v412_v33  ;;  %v417_v38 = vsel %vm405_vm6, %v399_v23, %v416_v34  ;;  %v368_v23 = vld [vmem:[%s1159_s5] sm:$0xf] }
  0x90   :  { %v200_v45 = vsel %vm189_vm1, nan, %v199_v42  ;;  %v310_v46 = vsel %vm189_vm1, nan, %v309_v43  ;;  %v419_v39 = vshll.u32 %v379_v5, 8  ;;  %v414_v40 = vsel %vm404_vm7, %v411_v35, %v413_v36 }
  0x91   :  { %v202_v47 = vsub.f32 1.0, %v200_v45  ;;  %v1016_v48 = vrot.slane %v310_v46, 7  ;;  %v201_v54 = vadd.f32 1.0, %v200_v45  ;;  %v418_v41 = vsel %vm404_vm7, %v415_v37, %v417_v38 }
  0x92   :  { %v1054_v42 = vmul.u32.u64.low %v419_v39, %v414_v40  ;;  %v1055_v43 = vmul.u32.u64.high %v419_v39, %v414_v40, %v1054_v42  ;;  %vm348_vm10 = vcmask 1040384   ;;  %vm1121_vm5 = vcmp.le.f32.partialorder %v371_v6, 0.7853982 }
  0x93   :  { %751 = vrcp.f32 %v202_v47  ;;  %v358_v49 = vsel %vm350_vm9, %v310_v46, %v1016_v48  ;;  %v1059_v45 = vmul.u32.u64.low %v419_v39, %v418_v41  ;;  %v1060_v46 = vmul.u32.u64.high %v419_v39, %v418_v41, %v1059_v45 }
  0x94   :  { %v1024_v51 = vsel %vm356_vm14, %v358_v49, %v1016_v48  ;;  %v408_v47 = vsel %vm406_vm3, %v396_v31, 2102212464  ;;  %v318_v49 = vld [vmem:[#allocation7] sm:$0x3]  ;;  %vm373_vm3 = vcmp.lt.s32.totalorder %v1020_v50, 0 }
  0x95   :  { %v409_v53 = vsel %vm405_vm6, %v393_v30, %v408_v47  ;;  %vm428_vm8 = vc.u32 %v1060_v46, %v1054_v42 }
  0xa0   :  { %v752_v56 = vpop.eup %751 }
  0xa1   :  { %v204_v57 = vmul.f32 %v752_v56, %v201_v54  ;;  %v410_v56 = vsel %vm404_vm7, %v407_v52, %v409_v53 }
  0xa2   :  { %v426_v60 = vmul.u32 %v419_v39, %v410_v56 }
  0xa3   :  { %753 = vlog2.f32 %v204_v57  ;;  %v429_v57 = vadd.s32 1, %v1055_v43 }
  0xb0   :  { %v754_v61 = vpop.eup %753 }
  0xb1   :  { %v206_v62 = vmul.f32 0.6931472, %v754_v61  ;;  %v430_v61 = vsel %vm428_vm8, %v429_v57, %v1055_v43 }
  0xb3   :  { %v207_v0 = vmul.f32 0.5, %v206_v62  ;;  %v431_v62 = vadd.s32 %v430_v61, %v426_v60 }
  0xb5   :  { %v312_v1 = vrot.slane %v207_v0, 7  ;;  %v432_v63 = vadd.s32 536870912, %v431_v62 }
  0xb7   :  { %v314_v10 = vsub.f32 %v207_v0, %v312_v1  ;;  %v1073_v0 = vshrl.u32 %v432_v63, 30 }
  0xb9   :  { %v315_v21 = vand.u32 2147483647, %v314_v10  ;;  %v434_v8 = vshll.u32 %v1073_v0, 30  ;;  %v457_v6 = vsub.s32 4, %v1073_v0 }
  0xbb   :  { %vm1040_vm4 = vcmp.lt.f32.partialorder %v315_v21, 1e-06  ;;  %v1076_v12 = vsub.s32 %v431_v62, %v434_v8 }
  0xbc   :  { %v317_v27 = vsel %vm1040_vm4, 1.0, %v314_v10 }
  0xbd   :  { %v320_v32 = vrot.slane %v317_v27, 1  ;;  %v437_v25 = vsub.s32 0, %v1076_v12 }
  0xbf   :  { %755 = vrcp.f32 %v320_v32  ;;  %v712_v30 = vmin.u32 %v437_v25, %v1076_v12 }
  0xc1   :  { %v439_v33 = vclz %v712_v30 }
  0xc3   :  { %v713_v36 = vadd.s32 4294967294, %v439_v33 }
  0xc5   :  { %vm714_vm12 = vcmp.lt.s32.totalorder %v713_v36, 0 }
  0xc6   :  { %v442_v52 = vsel %vm714_vm12, 0, %v713_v36 }
  0xcc   :  { %v756_v54 = vpop.eup %755 }
  0xcd   :  { %v323_v55 = vmul.f32 %v756_v54, %v318_v49 }
  0xcf   :  { %v328_v58 = vrot.slane %v323_v55, 7 }
  0xd1   :  { %v330_v59 = vsel %vm1040_vm4, %v1016_v48, %v328_v58 }
  0xd2   :  { %757 = vrcp.f32 %v330_v59 }
  0xdf   :  { %v758_v1 = vpop.eup %757 }
  0xe0   :  { %v334_v4 = vrot.slane %v758_v1, 1 }
  0xe2   :  { %v336_v9 = vmul.f32 %v334_v4, %v331_v3 }
  0xe4   :  { %v337_v10 = vadd.f32 %v336_v9, %v89_v7  ;;  %v339_v11 = vrot.slane %v336_v9, 1 }
  0xe6   :  { %v341_v48 = vadd.f32 %v339_v11, %v337_v10  ;;  %v343_v13 = vrot.slane %v337_v10, 7  ;;  %v360_v15 = vrot.slane %v337_v10, 6 }
  0xe8   :  { %v346_v17 = vrot.slane %v341_v48, 6  ;;  %v349_v19 = vsel %vm348_vm10, %v89_v7, %v343_v13  ;;  %v362_v21 = vrot.slane %v341_v48, 5 }
  0xe9   :  { %v364_v24 = vsel %vm350_vm9, %v349_v19, %v360_v15 }
  0xea   :  { %v1084_v26 = vsel %vm350_vm9, %v349_v19, %v346_v17  ;;  %v365_v27 = vsel %vm356_vm14, %v364_v24, %v362_v21  ;;  %v443_v24 = vsub.s32 32, %v442_v52 }
  0xeb   :  { %v369_v28 = vsub.f32 %v368_v23, %v365_v27  ;;  %v427_v23 = vadd.s32 %v1054_v42, %v1060_v46 }
  0xed   :  { %v1088_v31 = vmul.f32 0.5, %v369_v28  ;;  %v445_v33 = vshrl.u32 %v427_v23, %v443_v24 }
  0xef   :  { %v482_v32 = vand.u32 2139095040, %v1088_v31  ;;  %v479_v34 = vand.u32 2147483647, %v1088_v31  ;;  %vm481_vm6 = vcmp.lt.s32.totalorder %v1088_v31, 0 }
  0xf1   :  { %v483_v5 = vshrl.u32 %v482_v32, 23  ;;  %v486_v38 = vand.u32 8388607, %v479_v34  ;;  %v444_v32 = vshll.u32 %v1076_v12, %v442_v52  ;;  %vm480_vm7 = vcmp.le.f32.partialorder %v479_v34, 0.7853982 }
  0xf3   :  { %v715_v35 = vadd.s32 4294967169, %v483_v5  ;;  %v487_v41 = vor.u32 8388608, %v486_v38 }
  0xf5   :  { %v489_v37 = vadd.s32 1, %v715_v35  ;;  %v527_v61 = vshll.u32 %v487_v41, 8 }
  0xf7   :  { %vm490_vm11 = vcmp.gt.s32.totalorder %v489_v37, 0 }
  0xf8   :  { %v491_v39 = vsel %vm490_vm11, %v489_v37, 0  ;;  %v446_v37 = vor.u32 %v445_v33, %v444_v32 }
  0xf9   :  { %v493_v40 = vand.u32 31, %v491_v39  ;;  %v492_v43 = vshrl.u32 %v491_v39, 5 }
  0xfa   :  { %v453_v46 = vcvt.s32.f32 %v446_v37 }
  0xfb   :  { %v494_v44 = vsub.s32 32, %v493_v40  ;;  %v496_v45 = vshll.u32 %v906_v14, %v493_v40  ;;  %v499_v47 = vshll.u32 %v907_v16, %v493_v40  ;;  %v502_v49 = vshll.u32 %v908_v18, %v493_v40 }
  0xfc   :  { %v505_v53 = vshll.u32 %v909_v20, %v493_v40  ;;  %v508_v54 = vshll.u32 %v910_v22, %v493_v40  ;;  %vm511_vm13 = vcmp.lt.s32.totalorder %v492_v43, 1  ;;  %vm514_vm15 = vcmp.lt.s32.totalorder %v492_v43, 4 }
  0xfd   :  { %v495_v55 = vshrl.u32 %v906_v14, %v494_v44  ;;  %v497_v56 = vshrl.u32 %v907_v16, %v494_v44  ;;  %v500_v57 = vshrl.u32 %v908_v18, %v494_v44  ;;  %v503_v58 = vshrl.u32 %v909_v20, %v494_v44 }
  0xfe   :  { %v506_v59 = vshrl.u32 %v910_v22, %v494_v44  ;;  %v509_v60 = vshrl.u32 %v911_v29, %v494_v44  ;;  %vm512_vm0 = vcmp.lt.s32.totalorder %v492_v43, 2  ;;  %vm513_vm1 = vcmp.lt.s32.totalorder %v492_v43, 3 }
  0xff   :  { %v498_v62 = vor.u32 %v497_v56, %v496_v45  ;;  %v501_v63 = vor.u32 %v500_v57, %v499_v47  ;;  %v504_v1 = vor.u32 %v503_v58, %v502_v49  ;;  %v447_v29 = vsub.s32 4294967266, %v442_v52 }
 0x100   :  { %v507_v3 = vor.u32 %v506_v59, %v505_v53  ;;  %v510_v4 = vor.u32 %v509_v60, %v508_v54 }
 0x101   :  { %v515_v14 = vsel %vm511_vm13, %v495_v55, %v498_v62  ;;  %v516_v16 = vsel %vm514_vm15, %v504_v1, 2102212464  ;;  %v519_v7 = vsel %vm511_vm13, %v498_v62, %v501_v63  ;;  %v523_v18 = vsel %vm511_vm13, %v501_v63, %v504_v1 }
 0x102   :  { %v517_v8 = vsel %vm513_vm1, %v501_v63, %v516_v16  ;;  %v520_v20 = vsel %vm514_vm15, %v507_v3, 920167782  ;;  %v524_v9 = vsel %vm514_vm15, %v510_v4, 1326507024  ;;  %v448_v25 = vadd.s32 127, %v447_v29 }
 0x103   :  { %v521_v22 = vsel %vm513_vm1, %v504_v1, %v520_v20  ;;  %v525_v10 = vsel %vm513_vm1, %v507_v3, %v524_v9  ;;  %v518_v11 = vsel %vm512_vm0, %v515_v14, %v517_v8  ;;  %v458_v14 = vsel %vm373_vm3, %v457_v6, %v1073_v0 }
 0x104   :  { %v522_v48 = vsel %vm512_vm0, %v519_v7, %v521_v22  ;;  %v526_v13 = vsel %vm512_vm0, %v523_v18, %v525_v10  ;;  %v534_v27 = vmul.u32 %v527_v61, %v518_v11  ;;  %v449_v5 = vshll.u32 %v448_v25, 23 }
 0x105   :  { %v1105_v15 = vmul.u32.u64.low %v527_v61, %v526_v13  ;;  %v1106_v17 = vmul.u32.u64.high %v527_v61, %v526_v13, %v1105_v15  ;;  %v1108_v19 = vmul.u32.u64.low %v527_v61, %v522_v48  ;;  %v1109_v21 = vmul.u32.u64.high %v527_v61, %v522_v48, %v1108_v19 }
 0x106   :  { %v450_v38 = vor.u32 4788187, %v449_v5  ;;  %v460_v8 = vsel %vm1121_vm5, 0, %v458_v14  ;;  %vm463_vm13 = vweird.f32 %v1020_v50  ;;  %vm571_vm1 = vweird.f32 %v1088_v31 }
 0x107   :  { %vm536_vm2 = vc.u32 %v1106_v17, %v1108_v19  ;;  %v537_v28 = vadd.s32 1, %v1109_v21  ;;  %v535_v12 = vadd.s32 %v1108_v19, %v1106_v17  ;;  %v464_v10 = vadd.s32 3, %v460_v8 }
 0x108   :  { %v451_v42 = vand.u32 2147483647, %v450_v38 }
 0x109   :  { %v538_v30 = vsel %vm536_vm2, %v537_v28, %v1109_v21  ;;  %v465_v48 = vand.u32 3, %v464_v10  ;;  %v476_v28 = vld [vmem:[#allocation10] sm:$0xf] }
 0x10a   :  { %v539_v35 = vadd.s32 %v538_v30, %v534_v27  ;;  %v454_v44 = vmul.f32 %v453_v46, %v451_v42 }
 0x10b   :  { %vm467_vm8 = vcmp.eq.s32.totalorder %v465_v48, 0  ;;  %vm470_vm10 = vcmp.eq.s32.totalorder %v465_v48, 2  ;;  %vm466_vm11 = vcmp.lt.s32.totalorder %v465_v48, 2 }
 0x10c   :  { %v540_v36 = vadd.s32 536870912, %v539_v35  ;;  %v455_v49 = vxor.u32 2147483648, %v454_v44 }
 0x10e   :  { %v541_v39 = vshrl.u32 %v540_v36, 30  ;;  %v456_v55 = vsel %vm373_vm3, %v455_v49, %v454_v44 }
 0x10f   :  { %v459_v61 = vsel %vm1121_vm5, %v1020_v50, %v456_v55 }
 0x110   :  { %v542_v40 = vshll.u32 %v541_v39, 30  ;;  %759 = vcosq.f32 %v459_v61  ;;  %v565_v7 = vsub.s32 4, %v541_v39 }
 0x111   :  { %761 = vsinq.f32 %v459_v61 }
 0x112   :  { %v543_v41 = vsub.s32 %v539_v35, %v542_v40  ;;  %v566_v9 = vsel %vm481_vm6, %v565_v7, %v541_v39  ;;  %v477_v35 = vmul.f32 %v476_v28, %v1024_v51 }
 0x113   :  { %v568_v29 = vsel %vm480_vm7, 0, %v566_v9 }
 0x114   :  { %v545_v43 = vsub.s32 0, %v543_v41  ;;  %v572_v13 = vadd.s32 3, %v568_v29 }
 0x116   :  { %v716_v45 = vmin.u32 %v545_v43, %v543_v41  ;;  %v573_v34 = vand.u32 3, %v572_v13 }
 0x118   :  { %v547_v47 = vclz %v716_v45  ;;  %vm578_vm12 = vcmp.eq.s32.totalorder %v573_v34, 2  ;;  %vm575_vm15 = vcmp.eq.s32.totalorder %v573_v34, 0  ;;  %vm574_vm0 = vcmp.lt.s32.totalorder %v573_v34, 2 }
 0x11a   :  { %v717_v53 = vadd.s32 4294967294, %v547_v47 }
 0x11c   :  { %vm718_vm4 = vcmp.lt.s32.totalorder %v717_v53, 0 }
 0x11d   :  { %v550_v54 = vsel %vm718_vm4, 0, %v717_v53  ;;  %v760_v0 = vpop.eup %759 }
 0x11e   :  { %v551_v56 = vsub.s32 32, %v550_v54  ;;  %v552_v57 = vshll.u32 %v543_v41, %v550_v54  ;;  %v555_v58 = vsub.s32 4294967266, %v550_v54  ;;  %v762_v11 = vpop.eup %761  ;;  %v471_v17 = vxor.u32 2147483648, %v760_v0 }
 0x11f   :  { %v468_v15 = vxor.u32 2147483648, %v762_v11 }
 0x120   :  { %v553_v59 = vshrl.u32 %v535_v12, %v551_v56  ;;  %v556_v60 = vadd.s32 127, %v555_v58  ;;  %v472_v21 = vsel %vm470_vm10, %v471_v17, %v762_v11 }
 0x121   :  { %v469_v19 = vsel %vm467_vm8, %v760_v0, %v468_v15  ;;  %v655_v0 = vlaneseq  ;;  %v912_v15 = vmov 0.0  }
 0x122   :  { %v554_v62 = vor.u32 %v553_v59, %v552_v57  ;;  %v557_v63 = vshll.u32 %v556_v60, 23  ;;  %v473_v25 = vsel %vm466_vm11, %v469_v19, %v472_v21  ;;  %v90_v19 = vld [vmem:[#allocation2 + $0x2] sm:$0x1] }
 0x123   :  { %v474_v33 = vsel %vm463_vm13, nan, %v473_v25  ;;  %v656_v34 = vshrl.u32 %v655_v0, 7 }
 0x124   :  { %v558_v1 = vor.u32 4788187, %v557_v63  ;;  %v561_v3 = vcvt.s32.f32 %v554_v62  ;;  %v475_v38 = vmul.f32 %v474_v33, %v474_v33 }
 0x126   :  { %v559_v4 = vand.u32 2147483647, %v558_v1 }
 0x128   :  { %v562_v16 = vmul.f32 %v561_v3, %v559_v4 }
 0x12a   :  { %v563_v18 = vxor.u32 2147483648, %v562_v16 }
 0x12c   :  { %v564_v20 = vsel %vm481_vm6, %v563_v18, %v562_v16 }
 0x12d   :  { %v567_v22 = vsel %vm480_vm7, %v1088_v31, %v564_v20 }
 0x12e   :  { %763 = vcosq.f32 %v567_v22 }
 0x12f   :  { %765 = vsinq.f32 %v567_v22 }
 0x13b   :  { %v764_v23 = vpop.eup %763 }
 0x13c   :  { %v766_v24 = vpop.eup %765  ;;  %v579_v27 = vxor.u32 2147483648, %v764_v23 }
 0x13d   :  { %v576_v30 = vxor.u32 2147483648, %v766_v24 }
 0x13e   :  { %v580_v32 = vsel %vm578_vm12, %v579_v27, %v766_v24 }
 0x13f   :  { %v577_v5 = vsel %vm575_vm15, %v764_v23, %v576_v30  ;;  %v913_v23 = vmov 0.7853982   ;;  %v654_v30 = vmul.f32 60.0, %v90_v19 }
 0x140   :  { %v581_v36 = vsel %vm574_vm0, %v577_v5, %v580_v32  ;;  %v657_v32 = vsub.s32 0, %v656_v34 }
 0x141   :  { %v582_v37 = vsel %vm571_vm1, nan, %v581_v36 }
 0x142   :  { %v583_v39 = vmul.f32 %v582_v37, %v582_v37  ;;  %v658_v36 = vrot.slane %v654_v30, %v657_v32  ;;  %v653_v37 = vld [vmem:[%s1161_s7] sm:$0xf]  ;;  %s914_s7 = smov [#allocation11]  }
 0x143   :  { %s688_s29 = sshll.u32 %s914_s7, 4  ;;  %s689_s29 = int_to_ptr.vmem [resolvable:$true] %s688_s29 }
 0x144   :  { %v584_v40 = vmul.f32 %v583_v39, %v477_v35  ;;  %s873_s30 = scalar_lea.vmem %s689_s29, 256  ;;  %p878_p12 = scmp.lt.s32.totalorder %s689_s29, %s689_s29 }
 0x145   :  { %p874_p11 = scmp.ne.s32.totalorder %s689_s29, %s873_s30  ;;  %p879_p13 = scmp.lt.s32.totalorder %s873_s30, %s873_s30 }
 0x146   :  { %v585_v42 = vadd.f32 %v584_v40, %v475_v38  ;;  %v659_v40 = vsub.f32 %v653_v37, %v658_v36 }
 0x147   :  { %p880_p0 = por %p879_p13, %p878_p12 }
 0x148   :  { %v586_v50 = vmax.f32 %v585_v42, 0.0  ;;  %v671_v42 = vrot.slane %v1084_v26, 5 }
 0x149   :  { %p881_p1 = pnand %p880_p0, %p874_p11 }
 0x14a   :  { %v587_v46 = vmin.f32 %v586_v50, 1.0 }
 0x14c   :  { %767 = vrsqrt.f32 %v587_v46  ;;  %v595_v41 = vsub.f32 1.0, %v587_v46  ;;  %vm590_vm2 = vcmp.eq.f32.partialorder %v587_v46, inf  ;;  %v593_v44 = vand.u32 2147483648, %v587_v46 }
 0x14d   :  { %vm592_vm3 = vcmp.eq.f32.partialorder %v587_v46, 0.0 }
 0x14e   :  { %769 = vrsqrt.f32 %v595_v41  ;;  %vm598_vm4 = vcmp.eq.f32.partialorder %v595_v41, inf  ;;  %v601_v51 = vand.u32 2147483648, %v595_v41  ;;  %vm600_vm5 = vcmp.eq.f32.partialorder %v595_v41, 0.0 }
 0x159   :  { %v768_v43 = vpop.eup %767 }
 0x15a   :  { %v589_v31 = vmul.f32 %v768_v43, %v587_v46 }
 0x15b   :  { %v770_v45 = vpop.eup %769 }
 0x15c   :  { %v591_v47 = vsel %vm590_vm2, %v587_v46, %v589_v31  ;;  %v597_v53 = vmul.f32 %v770_v45, %v595_v41  ;;  %vm662_vm2 = vcmask 1043456  }
 0x15d   :  { %v594_v49 = vsel %vm592_vm3, %v593_v44, %v591_v47  ;;  %vm677_vm3 = vcmask 1045504  }
 0x15e   :  { %v599_v12 = vsel %vm598_vm4, %v595_v41, %v597_v53  ;;  %v604_v52 = vand.u32 2147483647, %v594_v49  ;;  %vm638_vm10 = vcmp.ne.f32.partialorder %v594_v49, %v594_v49  ;;  %vm635_vm15 = vcmp.eq.f32.partialorder %v594_v49, 0.0 }
 0x15f   :  { %v602_v54 = vsel %vm600_vm5, %v601_v51, %v599_v12  ;;  %v648_v28 = vand.u32 2147483648, %v594_v49  ;;  %v676_v41 = vsel %vm356_vm14, %v977_v2, %v671_v42 }
 0x160   :  { %v603_v55 = vand.u32 2147483647, %v602_v54  ;;  %vm633_vm7 = vcmp.lt.s32.totalorder %v602_v54, 0  ;;  %vm637_vm8 = vcmp.ne.f32.partialorder %v602_v54, %v602_v54  ;;  %vm630_vm11 = vcmp.lt.f32.partialorder %v602_v54, 0.0 }
 0x161   :  { %vm644_vm13 = vcmp.eq.s32.totalorder %v604_v52, inf  ;;  %v634_v17 = vsel %vm633_vm7, 3.1415927, %v912_v15  ;;  %vm639_vm0 = vmor %vm637_vm8, %vm638_vm10  ;;  %v642_v24 = vsel %vm630_vm11, 2.3561945, %v913_v23 }
 0x162   :  { %v606_v56 = vmax.f32 %v603_v55, %v604_v52  ;;  %v605_v57 = vmin.f32 %v603_v55, %v604_v52  ;;  %vm627_vm6 = vcmp.gt.f32.partialorder %v604_v52, %v603_v55  ;;  %vm643_vm12 = vcmp.eq.s32.totalorder %v603_v55, inf }
 0x163   :  { %vm645_vm1 = vmand %vm643_vm12, %vm644_vm13 }
 0x164   :  { %771 = vrcp.f32 %v606_v56 }
 0x171   :  { %v772_v58 = vpop.eup %771 }
 0x172   :  { %v608_v59 = vmul.f32 %v772_v58, %v605_v57 }
 0x174   :  { %v609_v60 = vmul.f32 %v608_v59, %v608_v59 }
 0x176   :  { %v610_v61 = vmul.f32 0.002785687, %v609_v60 }
 0x178   :  { %v611_v62 = vadd.f32 -0.015866, %v610_v61 }
 0x17a   :  { %v612_v63 = vmul.f32 %v611_v62, %v609_v60 }
 0x17c   :  { %v613_v6 = vadd.f32 0.04247222, %v612_v63 }
 0x17e   :  { %v614_v1 = vmul.f32 %v613_v6, %v609_v60 }
 0x180   :  { %v615_v3 = vadd.f32 -0.074975304, %v614_v1 }
 0x182   :  { %v616_v4 = vmul.f32 %v615_v3, %v609_v60 }
 0x184   :  { %v617_v14 = vadd.f32 0.1064488, %v616_v4 }
 0x186   :  { %v618_v16 = vmul.f32 %v617_v14, %v609_v60 }
 0x188   :  { %v619_v7 = vadd.f32 -0.14207031, %v618_v16 }
 0x18a   :  { %v620_v18 = vmul.f32 %v619_v7, %v609_v60 }
 0x18c   :  { %v621_v8 = vadd.f32 0.19993454, %v620_v18 }
 0x18e   :  { %v622_v20 = vmul.f32 %v621_v8, %v609_v60 }
 0x190   :  { %v623_v9 = vadd.f32 -0.33333147, %v622_v20 }
 0x192   :  { %v624_v22 = vmul.f32 %v623_v9, %v609_v60 }
 0x194   :  { %v625_v10 = vmul.f32 %v624_v22, %v608_v59 }
 0x196   :  { %v626_v29 = vadd.f32 %v625_v10, %v608_v59 }
 0x198   :  { %v628_v11 = vsub.f32 1.5707964, %v626_v29 }
 0x19a   :  { %v629_v48 = vsel %vm627_vm6, %v628_v11, %v626_v29 }
 0x19b   :  { %v631_v13 = vsub.f32 3.1415927, %v629_v48 }
 0x19d   :  { %v632_v21 = vsel %vm630_vm11, %v631_v13, %v629_v48 }
 0x19e   :  { %v636_v25 = vsel %vm635_vm15, %v634_v17, %v632_v21 }
 0x19f   :  { %v640_v27 = vsel %vm639_vm0, nan, %v636_v25 }
 0x1a0   :  { %v646_v33 = vsel %vm645_vm1, %v642_v24, %v640_v27 }
 0x1a1   :  { %v647_v5 = vand.u32 2147483647, %v646_v33 }
 0x1a3   :  { %v649_v35 = vor.u32 %v648_v28, %v647_v5 }
 0x1a5   :  { %v650_v38 = vmul.f32 2.0, %v649_v35 }
 0x1a7   :  { %v651_v39 = vmul.f32 57.29578, %v650_v38 }
 0x1a9   :  { %v652_v50 = vmul.f32 60.0, %v651_v39 }
 0x1ab   :  { %v660_v46 = vsub.f32 %v659_v40, %v652_v50 }
 0x1ad   :  { %v661_v43 = vmul.f32 %v660_v46, %v660_v46  ;;  %v674_v44 = vrot.slane %v660_v46, 2 }
 0x1af   :  { %v663_v31 = vsel %vm662_vm2, %v661_v43, 0.0  ;;  %v678_v45 = vsel %vm677_vm3, %v676_v41, %v674_v44 }
 0x1b0   :  { %v664_v47 = vrot.slane %v663_v31, 4  ;;  %681 = vst [vmem:[#allocation11] sm:$0xff] %v678_v45 }
 0x1b2   :  { %v665_v51 = vadd.f32 %v664_v47, %v663_v31 }
 0x1b4   :  { %v666_v49 = vrot.slane %v665_v51, 2 }
 0x1b6   :  { %v667_v53 = vadd.f32 %v666_v49, %v665_v51 }
 0x1b8   :  { %v668_v12 = vrot.slane %v667_v53, 1 }
 0x1ba   :  { %v669_v26 = vadd.f32 %v668_v12, %v667_v53 }
 0x1bc   :  { %v679_v52 = vsel %vm350_vm9, %v674_v44, %v669_v26 }
 0x1bd   :  { %v680_v54 = vsel %vm356_vm14, %v679_v52, 0.0 }
 0x1be   :  { %682 = vst [vmem:[#allocation11 + $0x8] sm:$0xff] %v680_v54 }
 0x1bf   :  { %884 = shalt.err (!%p881_p1)
}
 0x1c0   :  { %s915_s9 = smov 128   ;;  %s916_s10 = smov 8  }
 0x1c1   :  { %694 = dma.vmem_to_hbm [thread:$0]  %s689_s29, 256, %s1162_s8, [#allocation4], %s915_s9, %s915_s9, %s916_s10  }
 0x1c2   :  { %899 = dma.done.wait [#allocation4], 256  }
 0x1c3   :  { %900 = vsyncadd [#allocation4], 4294967040 }
 0x1c4   :  { %698 = vsyncpa [#allocation3], 1 }
 0x1c5   :  { %699 = vsyncpa [#allocation6], 1 }
 0x1c6   :  { %700 = vsyncpa [#allocation9], 1 }
 0x1c7   :  { %701 = vsyncpa [#allocation4], 1 }

</bundles_post_ra>
